<compile_context>
chip_gen: v7x
topology: tpu7x:2x2x1
jax: 0.10.0
libtpu: 0.0.40
codegen_flags: <defaults>
</compile_context>

<pallas_src>
import functools

import jax
import jax.numpy as jnp
from jax import lax
from jax.experimental import pallas as pl
from jax.experimental.pallas import tpu as pltpu


VMEM_LIMIT = 32 * 1024 * 1024  # explicit scoped-VMEM budget for all kernels


def _round_up(x, m):
    return ((x + m - 1) // m) * m


# ----------------------------------------------------------------------------
# Pallas kernel 1: tiled matmul + bias (+ optional ReLU)   (per-scale 1x1 conv)
# ----------------------------------------------------------------------------
def _matmul_bias_kernel(x_ref, w_ref, b_ref, o_ref, *, relu):
    acc = jnp.dot(x_ref[...], w_ref[...], preferred_element_type=jnp.float32)
    acc = acc + b_ref[...]
    if relu:
        acc = jnp.maximum(acc, 0.0)
    o_ref[...] = acc.astype(o_ref.dtype)


def pallas_matmul_bias(x, w, b, relu=False, out_dtype=jnp.float32, tm=512):
    """(M, K) @ (K, N) + b (+ ReLU), tiled over M with padding to the tile."""
    M, K = x.shape
    K2, N = w.shape
    assert K == K2
    TM = tm if M >= tm else _round_up(M, 16)
    Mp = _round_up(M, TM)
    if Mp != M:
        x = jnp.concatenate([x, jnp.zeros((Mp - M, K), x.dtype)], axis=0)
    out = pl.pallas_call(
        functools.partial(_matmul_bias_kernel, relu=relu),
        out_shape=jax.ShapeDtypeStruct((Mp, N), out_dtype),
        grid=(Mp // TM,),
        in_specs=[
            pl.BlockSpec((TM, K), lambda i: (i, 0)),
            pl.BlockSpec((K, N), lambda i: (0, 0)),
            pl.BlockSpec((1, N), lambda i: (0, 0)),
        ],
        out_specs=pl.BlockSpec((TM, N), lambda i: (i, 0)),
        compiler_params=pltpu.CompilerParams(
            dimension_semantics=("parallel",),
            vmem_limit_bytes=VMEM_LIMIT),
    )(x, w, b.reshape(1, N))
    return out[:M]


# ----------------------------------------------------------------------------
# Pallas kernel 2: fused FLoSP (all cams, 4 scales) + Conv3DCollapse + 3D head
#   Per voxel tile:
#     1. gather each camera's 4-scale feature rows (SMEM indices -> dynamic
#        row loads from VMEM-resident feature maps) and accumulate the scales,
#     2. Conv3DCollapse (cam*F -> F) as a sum of per-camera matmuls + ReLU,
#     3. UNet3D head stand-in: two 1x1x1 convs; hidden stays in vregs/VMEM.
#   Only the n_classes logits are written back to HBM.
# ----------------------------------------------------------------------------
def _flosp_collapse_head_kernel(*refs, n_cam, n_scales, tv, nvox_pad):
    idx_ref = refs[0]                                   # flat int32 in SMEM
    nfeat = n_cam * n_scales
    feat_refs = refs[1:1 + nfeat]                       # [(HWp_s, F)] per (cam, scale)
    wc_ref, bc_ref, w1_ref, b1_ref, w2_ref, b2_ref = refs[1 + nfeat:7 + nfeat]
    out_ref = refs[7 + nfeat]                           # (tv, n_classes)
    gath_refs = refs[8 + nfeat:8 + nfeat + n_cam]       # per-camera (tv, F) scratch

    b = pl.program_id(0)
    i = pl.program_id(1)
    feat_dim = gath_refs[0].shape[1]

    # Per-(camera, scale) base offsets into the flat [b, cam, scale, voxel] table.
    bases = [[(((b * n_cam + c) * n_scales + s) * nvox_pad) + i * tv
              for s in range(n_scales)] for c in range(n_cam)]

    # ---- FLoSP gather: one (1, F) row load per (voxel, cam, scale) --------
    def gather_row(v, carry):
        for c in range(n_cam):
            acc = None
            for s in range(n_scales):
                pix = idx_ref[bases[c][s] + v]
                row = feat_refs[c * n_scales + s][pl.ds(pix, 1), :]
                acc = row if acc is None else acc + row
            gath_refs[c][pl.ds(v, 1), :] = acc
        return carry

    lax.fori_loop(0, tv, gather_row, 0, unroll=8)

    # ---- Conv3DCollapse: cam-major (cam*F -> F) 1x1x1 conv + ReLU ---------
    acc = jnp.zeros((tv, feat_dim), jnp.float32)
    for c in range(n_cam):
        acc = acc + jnp.dot(gath_refs[c][...], wc_ref[c],
                            preferred_element_type=jnp.float32)
    col = jnp.maximum(acc + bc_ref[...], 0.0)

    # ---- UNet3D head stand-in: two 1x1x1 convs --------------------------
    h = jnp.maximum(
        jnp.dot(col, w1_ref[...], preferred_element_type=jnp.float32) + b1_ref[...],
        0.0)
    # TODO(synk): logits lane dim (n_classes=2) is narrow -> masked stores; a
    # lane-dense (classes, voxels) output layout would further speed the store.
    out_ref[...] = (jnp.dot(h, w2_ref[...], preferred_element_type=jnp.float32)
                    + b2_ref[...])


def pallas_flosp_collapse_head(idx_flat, feats, wc, bc, w1, b1, w2, b2, *,
                               batch, nvox_pad, tv, n_cam, n_scales):
    feat_dim = feats[0].shape[-1]
    hid = w1.shape[1]
    n_classes = w2.shape[1]

    kernel = functools.partial(_flosp_collapse_head_kernel,
                               n_cam=n_cam, n_scales=n_scales,
                               tv=tv, nvox_pad=nvox_pad)

    # TODO(synk): at full MonoScene resolution the scale-1 feature map should
    # stay in HBM (memory_space=pl.ANY) with DMA gathers instead of being made
    # VMEM-resident per batch step; at these sizes VMEM residency is cheapest.
    feat_specs = [pl.BlockSpec((None,) + f.shape[1:], lambda b, i, idx: (b, 0, 0))
                  for f in feats]
    weight_specs = [
        pl.BlockSpec(wc.shape, lambda b, i, idx: (0, 0, 0)),
        pl.BlockSpec((1, feat_dim), lambda b, i, idx: (0, 0)),
        pl.BlockSpec(w1.shape, lambda b, i, idx: (0, 0)),
        pl.BlockSpec((1, hid), lambda b, i, idx: (0, 0)),
        pl.BlockSpec(w2.shape, lambda b, i, idx: (0, 0)),
        pl.BlockSpec((1, n_classes), lambda b, i, idx: (0, 0)),
    ]

    grid_spec = pltpu.PrefetchScalarGridSpec(
        num_scalar_prefetch=1,
        grid=(batch, nvox_pad // tv),
        in_specs=feat_specs + weight_specs,
        out_specs=pl.BlockSpec((None, tv, n_classes), lambda b, i, idx: (b, i, 0)),
        scratch_shapes=[pltpu.VMEM((tv, feat_dim), jnp.float32)
                        for _ in range(n_cam)],
    )

    return pl.pallas_call(
        kernel,
        out_shape=jax.ShapeDtypeStruct((batch, nvox_pad, n_classes), jnp.float32),
        grid_spec=grid_spec,
        compiler_params=pltpu.CompilerParams(
            dimension_semantics=("parallel", "parallel"),
            vmem_limit_bytes=VMEM_LIMIT),
    )(idx_flat, *feats, wc, bc.reshape(1, feat_dim), w1, b1.reshape(1, hid),
      w2, b2.reshape(1, n_classes))


# ----------------------------------------------------------------------------
# Glue (plain JAX): pooling, index math, layout shuffles, parameter setup
# ----------------------------------------------------------------------------
def _avg_pool2d(x, s):
    if s == 1:
        return x
    B, C, H, W = x.shape
    return x.reshape(B, C, H // s, s, W // s, s).mean(axis=(3, 5))


def mono_net_forward(params, imgs, projected_pix, fov_mask, scene_size):
    X, Y, Z = scene_size
    n_vox = X * Y * Z
    B, n_cam, C_in, H, W = imgs.shape
    scales = (1, 2, 4, 8)
    n_scales = len(scales)
    feat_dim = params["conv2d_1"][0].shape[1]

    # ---- UNet2D stand-in: all cams+batches folded into one M dimension ----
    x2d = jnp.transpose(imgs, (1, 0, 2, 3, 4)).reshape(n_cam * B, C_in, H, W)
    per_scale = {}
    for s in scales:
        xs = _avg_pool2d(x2d, s)
        Hs, Ws = H // s, W // s
        xf = jnp.transpose(xs, (0, 2, 3, 1)).reshape(n_cam * B * Hs * Ws, C_in)
        w, bias = params[f"conv2d_{s}"]
        y = pallas_matmul_bias(xf.astype(jnp.bfloat16), w.astype(jnp.bfloat16),
                               bias, relu=True)                     # (M, F) f32
        y = y.reshape(n_cam, B, Hs * Ws, feat_dim)
        hw = Hs * Ws
        hwp = _round_up(hw + 1, 8)        # +1 zero sentinel row for out-of-FOV
        per_scale[s] = jnp.pad(y, ((0, 0), (0, 0), (0, hwp - hw), (0, 0)))

    # One feature slab per (camera, scale): (B, HWp_s, F)
    feats = [per_scale[s][c] for c in range(n_cam) for s in scales]

    # ---- FLoSP voxel->pixel indices for all (b, cam, scale, voxel) --------
    tv = 512 if n_vox >= 512 else _round_up(n_vox, 8)
    nvox_pad = _round_up(n_vox, tv)
    idx_cols = []
    for s in scales:
        Hs, Ws = H // s, W // s
        hw = Hs * Ws
        px = projected_pix[..., 0] // s                   # (B, n_cam, n_vox)
        py = projected_pix[..., 1] // s
        idx = py * Ws + px
        idx = jnp.where(fov_mask, idx, hw)   # torch: img_indices[~fov_mask] = h*w
        idx = jnp.clip(idx, 0, hw).astype(jnp.int32)
        idx = jnp.pad(idx, ((0, 0), (0, 0), (0, nvox_pad - n_vox)),
                      constant_values=hw)
        idx_cols.append(idx)
    idx_all = jnp.stack(idx_cols, axis=2)                 # (B, cam, scale, Nvp)
    idx_flat = idx_all.reshape(-1)                        # [b, cam, scale, vox]

    # ---- fused FLoSP + Conv3DCollapse + UNet3D 1x1x1 head -----------------
    wc, bc = params["collapse"]
    w1, b1 = params["c3d_1"]
    w2, b2 = params["c3d_2"]
    logits = pallas_flosp_collapse_head(
        idx_flat, feats, wc, bc, w1, b1, w2, b2,
        batch=B, nvox_pad=nvox_pad, tv=tv, n_cam=n_cam, n_scales=n_scales)

    out = logits[:, :n_vox, :].reshape(B, X, Y, Z, -1)
    return jnp.transpose(out, (0, 4, 1, 2, 3))            # (B, cls, X, Y, Z)


def init_params(key, c_in, feat, n_cam, hid, n_classes):
    keys = jax.random.split(key, 11)
    params = {}
    for t, s in enumerate((1, 2, 4, 8)):
        params[f"conv2d_{s}"] = (
            jax.random.normal(keys[t], (c_in, feat), jnp.float32) * 0.2,
            jax.random.normal(keys[4 + t], (feat,), jnp.float32) * 0.01,
        )
    params["collapse"] = (        # (n_cam, F, F): camera-major collapse weight
        jax.random.normal(keys[8], (n_cam, feat, feat), jnp.float32)
        / jnp.sqrt(n_cam * feat),
        jnp.zeros((feat,), jnp.float32),
    )
    params["c3d_1"] = (
        jax.random.normal(keys[9], (feat, hid), jnp.float32) / jnp.sqrt(feat),
        jnp.zeros((hid,), jnp.float32),
    )
    params["c3d_2"] = (
        jax.random.normal(keys[10], (hid, n_classes), jnp.float32) / jnp.sqrt(hid),
        jnp.zeros((n_classes,), jnp.float32),
    )
    return params


if __name__ == "__main__":
    # Small synthetic shapes (module constants 200x200x16 scene scaled down;
    # feature width 104 / n_classes 2 kept from the module).
    B, N_CAM, C_IN, H, W = 2, 2, 3, 16, 16
    FEAT, HID, N_CLASSES = 104, 64, 2
    SCENE = (8, 8, 4)
    N_VOX = SCENE[0] * SCENE[1] * SCENE[2]

    key = jax.random.PRNGKey(0)
    k1, k2, k3, k4, kp = jax.random.split(key, 5)
    imgs = jax.random.normal(k1, (B, N_CAM, C_IN, H, W), jnp.float32)
    pix_x = jax.random.randint(k2, (B, N_CAM, N_VOX, 1), 0, W)
    pix_y = jax.random.randint(k3, (B, N_CAM, N_VOX, 1), 0, H)
    projected_pix = jnp.concatenate([pix_x, pix_y], axis=-1).astype(jnp.int32)
    fov_mask = jax.random.bernoulli(k4, 0.7, (B, N_CAM, N_VOX))

    params = init_params(kp, C_IN, FEAT, N_CAM, HID, N_CLASSES)

    out = mono_net_forward(params, imgs, projected_pix, fov_mask, SCENE)
    out = jax.block_until_ready(out)
    assert out.shape == (B, N_CLASSES, *SCENE), out.shape
    assert bool(jnp.all(jnp.isfinite(out)))
    print("KERNEL_OK")
</pallas_src>

<mosaic_0001>
module attributes {stable_mosaic.version = 11 : i64} {
  func.func @_matmul_bias_kernel(%arg0: i32, %arg1: memref<512x3xbf16, #tpu.memory_space<vmem>>, %arg2: memref<3x104xbf16, #tpu.memory_space<vmem>>, %arg3: memref<1x104xf32, #tpu.memory_space<vmem>>, %arg4: memref<512x104xf32, #tpu.memory_space<vmem>>) attributes {dimension_semantics = [#tpu.dimension_semantics<parallel>], iteration_bounds = array<i64: 2>, scalar_prefetch = 0 : i64, scratch_operands = 0 : i64, tpu.core_type = #tpu.core_type<tc>, window_params = [{transform_indices = @transform_0, window_bounds = array<i64: 512, 3>}, {pipeline_mode = #tpu.pipeline_mode<synchronous>, transform_indices = @transform_1, window_bounds = array<i64: 3, 104>}, {pipeline_mode = #tpu.pipeline_mode<synchronous>, transform_indices = @transform_2, window_bounds = array<i64: 1, 104>}, {transform_indices = @transform_3, window_bounds = array<i64: 512, 104>}]} {
    %c0 = arith.constant 0 : index
    %c0_0 = arith.constant 0 : index
    %0 = vector.load %arg1[%c0, %c0_0] : memref<512x3xbf16, #tpu.memory_space<vmem>>, vector<512x3xbf16>
    %c0_1 = arith.constant 0 : index
    %c0_2 = arith.constant 0 : index
    %1 = vector.load %arg2[%c0_1, %c0_2] : memref<3x104xbf16, #tpu.memory_space<vmem>>, vector<3x104xbf16>
    %cst = arith.constant dense<0.000000e+00> : vector<512x104xf32>
    %2 = tpu.matmul %0, %1, %cst {dimension_numbers = #tpu.dot_dimension_numbers<[1], [0], [0], [1], [0, 0, 1, 1], [], []>} : vector<512x3xbf16>, vector<3x104xbf16>, vector<512x104xf32> -> vector<512x104xf32>
    %c0_3 = arith.constant 0 : index
    %c0_4 = arith.constant 0 : index
    %3 = vector.load %arg3[%c0_3, %c0_4] : memref<1x104xf32, #tpu.memory_space<vmem>>, vector<1x104xf32>
    %4 = vector.broadcast %3 : vector<1x104xf32> to vector<512x104xf32>
    %5 = arith.addf %2, %4 : vector<512x104xf32>
    %cst_5 = arith.constant 0.000000e+00 : f32
    %6 = vector.broadcast %cst_5 : f32 to vector<512x104xf32>
    %7 = arith.maximumf %5, %6 : vector<512x104xf32>
    %c0_6 = arith.constant 0 : index
    %c0_7 = arith.constant 0 : index
    %8 = vector.load %arg4[%c0_6, %c0_7] : memref<512x104xf32, #tpu.memory_space<vmem>>, vector<512x104xf32>
    tpu.vector_store %arg4[%c0_6, %c0_7], %7 {strides = array<i32>} : memref<512x104xf32, #tpu.memory_space<vmem>>, vector<512x104xf32>,
    return
  }
  func.func @transform_0(%arg0: i32) -> (i32, i32) {
    %c0_i32 = arith.constant 0 : i32
    %c0_i32_0 = arith.constant 0 : i32
    return %arg0, %c0_i32 : i32, i32
  }
  func.func @transform_1(%arg0: i32) -> (i32, i32) {
    %c0_i32 = arith.constant 0 : i32
    %c0_i32_0 = arith.constant 0 : i32
    %c0_i32_1 = arith.constant 0 : i32
    return %c0_i32, %c0_i32_0 : i32, i32
  }
  func.func @transform_2(%arg0: i32) -> (i32, i32) {
    %c0_i32 = arith.constant 0 : i32
    %c0_i32_0 = arith.constant 0 : i32
    %c0_i32_1 = arith.constant 0 : i32
    return %c0_i32, %c0_i32_0 : i32, i32
  }
  func.func @transform_3(%arg0: i32) -> (i32, i32) {
    %c0_i32 = arith.constant 0 : i32
    %c0_i32_0 = arith.constant 0 : i32
    return %arg0, %c0_i32 : i32, i32
  }
}

</mosaic_0001>

<bundles_post_ra>
// kernel: tpu_custom_call.1
= control target key start
LH: loop header
LB: loop body
LE: loop exit
PB: predicated region body
PF: predicated region fallthrough
CT: control target
= control target key end

     0   :  { %s1232_s12 = smov 0   ;;  %s1521_s0 = inlined_call_operand.vmem [shape: bf16[1024,3], index: 0, kind: input, shape index: {}]   ;;  %s1522_s1 = inlined_call_operand.vmem [shape: bf16[3,104], index: 1, kind: input, shape index: {}]   ;;  %s1523_s2 = inlined_call_operand.vmem [shape: f32[1,104], index: 2, kind: input, shape index: {}]   ;;  %s1524_s3 = inlined_call_operand.vmem [shape: f32[1024,104], index: 3, kind: output, shape index: {}]  }
   0x1 LB: > { %s985_s13 = sadd.s32 4294967295, %s1209_s12   ;;  %p989_p0 = scmp.ge.s32.totalorder %s1209_s12, 1  ;;  %s1209_s12 = sphi %s1232_s12, %s13_s12  }
   0x2   : > { %p138_p1 = scmp.lt.s32.totalorder %s1209_s12, 3 }
   0x4   : > { %p139_p2 = pnand %p989_p0, %p138_p1 }
   0x5   : > { %v239_v0 = vld [vmem:[%s1522_s1] sm:$0x3] (!%p139_p2)  ;;  %vm504_vm0 = vcmask (!%p139_p2), 1040384   ;;  %vm505_vm1 = vcmask (!%p139_p2), 1041408   ;;  %s990_s16 = sshll.u32 (!%p139_p2), %s985_s13, 6  ;;  %v1211_v1 = vmov (!%p139_p2), 65535  }
   0x6   : > { %142 = sbr.rel (%p139_p2) target bundleno = 295 (0x127), region = 32  ;;  %v506_v2 = vsel (!%p139_p2), %vm504_vm0, 4294967295, %v1211_v1  ;;  %p163_p3 = scmp.lt.s32.totalorder (!%p139_p2), %s990_s16, 127  ;;  %vm407_vm2 = vcmask (!%p139_p2), 23552   ;;  %v1318_v37 = vld [vmem:[%s1523_s2] ss:$0 sm:$0xff] (!%p139_p2) }
   0x7   : > { %v507_v3 = vsel (!%p139_p2), %vm505_vm1, %v506_v2, 0  ;;  %vm864_vm3 = vcmask (!%p139_p2), 850944  }
   0x8   : > { %v509_v4 = vand.u32 (!%p139_p2), %v507_v3, %v239_v0 }
   0xa   : > { %1094 = vmatprep.subr.bf16.mxu0 (!%p139_p2), %v509_v4  ;;  %1160 = vmatprep.subr.bf16.mxu1 (!%p139_p2), %v509_v4 }
   0xb   : > { %1095 = vmatpush3.bf16.msra.mxu0 (!%p139_p2), %v509_v4  ;;  %1161 = vmatpush3.bf16.msra.mxu1 (!%p139_p2), %v509_v4 }
   0xd   : > { %s1526_s16 = smov (!%p163_p3, %s990_s16), 127 }
   0xe   : > { %s991_s17 = sshll.u32 %s1526_s16, 2  ;;  %s993_s23 = sshll.u32 %s1526_s16, 3 }
   0xf   : > { %s1249_s20 = scalar_lea.vmem %s1521_s0, %s991_s17  ;;  %s1325_s26 = scalar_lea.vmem %s1524_s3, %s993_s23 }
  0x10   : > { %v1171_v5 = vld [vmem:[%s1249_s20] sm:$0xff]   ;;  %v1173_v7 = vld [vmem:[%s1249_s20 + $0x8] sm:$0xff]   ;;  %v1175_v9 = vld [vmem:[%s1249_s20 + $0x10] sm:$0xff]  }
  0x11   : > { %v1172_v6 = vld [vmem:[%s1249_s20 + $0x80] sm:$0xff]   ;;  %1096 = vmatprep.mubr.msk.bf16.mxu0 %vm407_vm2, %v1171_v5  ;;  %v1174_v8 = vld [vmem:[%s1249_s20 + $0x88] sm:$0xff]   ;;  %v1176_v10 = vld [vmem:[%s1249_s20 + $0x90] sm:$0xff]  }
  0x12   : > { %1128 = vmatprep.mubr.msk.bf16.mxu1 %vm407_vm2, %v1172_v6  ;;  %1097 = vmatmul.mubr.msk.bf16.vlgmr.msra.gmra.mrb[0].mxu0 %vm407_vm2, %v1173_v7  ;;  %v1177_v11 = vld [vmem:[%s1249_s20 + $0x18] sm:$0xff]   ;;  %v1179_v13 = vld [vmem:[%s1249_s20 + $0x20] sm:$0xff]   ;;  %v1181_v15 = vld [vmem:[%s1249_s20 + $0x28] sm:$0xff]  }
  0x13   : > { %1129 = vmatmul.mubr.msk.bf16.vlgmr.msra.gmra.mrb[0].mxu1 %vm407_vm2, %v1174_v8  ;;  %1100 = vmatprep.mubr.msk.bf16.mxu0 %vm407_vm2, %v1175_v9  ;;  %v1178_v12 = vld [vmem:[%s1249_s20 + $0x98] sm:$0xff]   ;;  %v1180_v14 = vld [vmem:[%s1249_s20 + $0xa0] sm:$0xff]   ;;  %v1182_v16 = vld [vmem:[%s1249_s20 + $0xa8] sm:$0xff]  }
  0x14   : > { %1132 = vmatprep.mubr.msk.bf16.mxu1 %vm407_vm2, %v1176_v10  ;;  %v1183_v17 = vld [vmem:[%s1249_s20 + $0x30] sm:$0xff]   ;;  %v1185_v19 = vld [vmem:[%s1249_s20 + $0x38] sm:$0xff]   ;;  %v1187_v21 = vld [vmem:[%s1249_s20 + $0x40] sm:$0xff]  }
  0x15   : > { %v1184_v18 = vld [vmem:[%s1249_s20 + $0xb0] sm:$0xff]   ;;  %v1186_v20 = vld [vmem:[%s1249_s20 + $0xb8] sm:$0xff]   ;;  %v1188_v22 = vld [vmem:[%s1249_s20 + $0xc0] sm:$0xff]  }
  0x16   : > { %v1189_v23 = vld [vmem:[%s1249_s20 + $0x48] sm:$0xff]   ;;  %v1191_v25 = vld [vmem:[%s1249_s20 + $0x50] sm:$0xff]   ;;  %v1193_v27 = vld [vmem:[%s1249_s20 + $0x58] sm:$0xff]  }
  0x17   : > { %v1190_v24 = vld [vmem:[%s1249_s20 + $0xc8] sm:$0xff]   ;;  %v1192_v26 = vld [vmem:[%s1249_s20 + $0xd0] sm:$0xff]   ;;  %v1194_v28 = vld [vmem:[%s1249_s20 + $0xd8] sm:$0xff]  }
  0x18   : > { %v1195_v29 = vld [vmem:[%s1249_s20 + $0x60] sm:$0xff]   ;;  %v1197_v31 = vld [vmem:[%s1249_s20 + $0x68] sm:$0xff]   ;;  %v1199_v33 = vld [vmem:[%s1249_s20 + $0x70] sm:$0xff]  }
  0x19   : > { %v1196_v30 = vld [vmem:[%s1249_s20 + $0xe0] sm:$0xff]   ;;  %v1198_v32 = vld [vmem:[%s1249_s20 + $0xe8] sm:$0xff]   ;;  %v1200_v34 = vld [vmem:[%s1249_s20 + $0xf0] sm:$0xff]  }
  0x1a   : > { %1101 = vmatmul.mubr.msk.bf16.gmra.mrb[4].mxu0 %vm407_vm2, %v1177_v11  ;;  %v1201_v35 = vld [vmem:[%s1249_s20 + $0x78] sm:$0xff]  }
  0x1b   : > { %1133 = vmatmul.mubr.msk.bf16.gmra.mrb[4].mxu1 %vm407_vm2, %v1178_v12  ;;  %1104 = vmatprep.mubr.msk.bf16.mxu0 %vm407_vm2, %v1179_v13  ;;  %v1202_v36 = vld [vmem:[%s1249_s20 + $0xf8] sm:$0xff]  }
  0x1c   : > { %1136 = vmatprep.mubr.msk.bf16.mxu1 %vm407_vm2, %v1180_v14 }
  0x22   : > { %1105 = vmatmul.mubr.msk.bf16.gmra.mrb[8].mxu0 %vm407_vm2, %v1181_v15 }
  0x23   : > { %1137 = vmatmul.mubr.msk.bf16.gmra.mrb[8].mxu1 %vm407_vm2, %v1182_v16  ;;  %1108 = vmatprep.mubr.msk.bf16.mxu0 %vm407_vm2, %v1183_v17 }
  0x24   : > { %1140 = vmatprep.mubr.msk.bf16.mxu1 %vm407_vm2, %v1184_v18 }
  0x2a   : > { %1109 = vmatmul.mubr.msk.bf16.gmra.mrb[12].mxu0 %vm407_vm2, %v1185_v19 }
  0x2b   : > { %1141 = vmatmul.mubr.msk.bf16.gmra.mrb[12].mxu1 %vm407_vm2, %v1186_v20  ;;  %1112 = vmatprep.mubr.msk.bf16.mxu0 %vm407_vm2, %v1187_v21 }
  0x2c   : > { %1144 = vmatprep.mubr.msk.bf16.mxu1 %vm407_vm2, %v1188_v22 }
  0x32   : > { %1113 = vmatmul.mubr.msk.bf16.gmra.mrb[16].mxu0 %vm407_vm2, %v1189_v23 }
  0x33   : > { %1145 = vmatmul.mubr.msk.bf16.gmra.mrb[16].mxu1 %vm407_vm2, %v1190_v24  ;;  %1116 = vmatprep.mubr.msk.bf16.mxu0 %vm407_vm2, %v1191_v25 }
  0x34   : > { %1148 = vmatprep.mubr.msk.bf16.mxu1 %vm407_vm2, %v1192_v26 }
  0x3a   : > { %1117 = vmatmul.mubr.msk.bf16.gmra.mrb[20].mxu0 %vm407_vm2, %v1193_v27 }
  0x3b   : > { %1149 = vmatmul.mubr.msk.bf16.gmra.mrb[20].mxu1 %vm407_vm2, %v1194_v28  ;;  %1120 = vmatprep.mubr.msk.bf16.mxu0 %vm407_vm2, %v1195_v29 }
  0x3c   : > { %1152 = vmatprep.mubr.msk.bf16.mxu1 %vm407_vm2, %v1196_v30 }
  0x42   : > { %1121 = vmatmul.mubr.msk.bf16.gmra.mrb[24].mxu0 %vm407_vm2, %v1197_v31 }
  0x43   : > { %1153 = vmatmul.mubr.msk.bf16.gmra.mrb[24].mxu1 %vm407_vm2, %v1198_v32  ;;  %1124 = vmatprep.mubr.msk.bf16.mxu0 %vm407_vm2, %v1199_v33 }
  0x44   : > { %1156 = vmatprep.mubr.msk.bf16.mxu1 %vm407_vm2, %v1200_v34 }
  0x4a   : > { %1125 = vmatmul.mubr.msk.bf16.gmra.mrb[28].mxu0 %vm407_vm2, %v1201_v35 }
  0x4b   : > { %1157 = vmatmul.mubr.msk.bf16.gmra.mrb[28].mxu1 %vm407_vm2, %v1202_v36 }
  0xe5   : > { %v1098_v38 = vpop.f32.mrb[0].mxu0 }
  0xe6   : > { %v554_v39 = vadd.f32 %v1098_v38, %v1318_v37  ;;  %v1130_v40 = vpop.f32.mrb[0].mxu1  ;;  %v545_v41 = vpop.f32.mrb[1].mxu0 }
  0xe7   : > { %v682_v42 = vadd.f32 %v1130_v40, %v1318_v37  ;;  %v546_v43 = vadd.f32 %v1318_v37, %v545_v41  ;;  %v673_v44 = vpop.f32.mrb[1].mxu1  ;;  %v1099_v45 = vpop.f32.mrb[2].mxu0 }
  0xe8   : > { %v802_v46 = vmax.f32 %v554_v39, 0.0  ;;  %v674_v47 = vadd.f32 %v1318_v37, %v673_v44  ;;  %v557_v48 = vadd.f32 %v1099_v45, %v1318_v37  ;;  %v1131_v49 = vpop.f32.mrb[2].mxu1  ;;  %v548_v50 = vpop.f32.mrb[3].mxu0 }
  0xe9   : > { %v834_v51 = vmax.f32 %v682_v42, 0.0  ;;  %v800_v52 = vmax.f32 %v546_v43, 0.0  ;;  %v685_v53 = vadd.f32 %v1131_v49, %v1318_v37  ;;  %v549_v54 = vadd.f32 %v1318_v37, %v548_v50  ;;  %v676_v55 = vpop.f32.mrb[3].mxu1 }
  0xea   : > { %867 = vst.msk [vmem:[%s1325_s26 + $0x10] sm:$0xff] %vm864_vm3, %v802_v46  ;;  %v832_v56 = vmax.f32 %v674_v47, 0.0  ;;  %v803_v57 = vmax.f32 %v557_v48, 0.0  ;;  %v677_v58 = vadd.f32 %v1318_v37, %v676_v55 }
  0xeb   : > { %899 = vst.msk [vmem:[%s1325_s26 + $0x110] sm:$0xff] %vm864_vm3, %v834_v51  ;;  %865 = vst.msk [vmem:[%s1325_s26] sm:$0xff] %vm864_vm3, %v800_v52  ;;  %v835_v59 = vmax.f32 %v685_v53, 0.0  ;;  %v801_v60 = vmax.f32 %v549_v54, 0.0 }
  0xec   : > { %897 = vst.msk [vmem:[%s1325_s26 + $0x100] sm:$0xff] %vm864_vm3, %v832_v56  ;;  %868 = vst.msk [vmem:[%s1325_s26 + $0x18] sm:$0xff] %vm864_vm3, %v803_v57  ;;  %v833_v61 = vmax.f32 %v677_v58, 0.0 }
  0xed   : > { %900 = vst.msk [vmem:[%s1325_s26 + $0x118] sm:$0xff] %vm864_vm3, %v835_v59  ;;  %866 = vst.msk [vmem:[%s1325_s26 + $0x8] sm:$0xff] %vm864_vm3, %v801_v60  ;;  %v1102_v62 = vpop.f32.mrb[4].mxu0 }
  0xee   : > { %898 = vst.msk [vmem:[%s1325_s26 + $0x108] sm:$0xff] %vm864_vm3, %v833_v61  ;;  %v570_v63 = vadd.f32 %v1102_v62, %v1318_v37  ;;  %v1134_v0 = vpop.f32.mrb[4].mxu1  ;;  %v561_v1 = vpop.f32.mrb[5].mxu0 }
  0xef   : > { %v698_v2 = vadd.f32 %v1134_v0, %v1318_v37  ;;  %v562_v3 = vadd.f32 %v1318_v37, %v561_v1  ;;  %v689_v4 = vpop.f32.mrb[5].mxu1  ;;  %v1103_v5 = vpop.f32.mrb[6].mxu0 }
  0xf0   : > { %v806_v6 = vmax.f32 %v570_v63, 0.0  ;;  %v690_v7 = vadd.f32 %v1318_v37, %v689_v4  ;;  %v573_v8 = vadd.f32 %v1103_v5, %v1318_v37  ;;  %v1135_v9 = vpop.f32.mrb[6].mxu1  ;;  %v564_v10 = vpop.f32.mrb[7].mxu0 }
  0xf1   : > { %v838_v11 = vmax.f32 %v698_v2, 0.0  ;;  %v804_v12 = vmax.f32 %v562_v3, 0.0  ;;  %v701_v13 = vadd.f32 %v1135_v9, %v1318_v37  ;;  %v565_v14 = vadd.f32 %v1318_v37, %v564_v10  ;;  %v692_v15 = vpop.f32.mrb[7].mxu1 }
  0xf2   : > { %871 = vst.msk [vmem:[%s1325_s26 + $0x30] sm:$0xff] %vm864_vm3, %v806_v6  ;;  %v836_v16 = vmax.f32 %v690_v7, 0.0  ;;  %v807_v17 = vmax.f32 %v573_v8, 0.0  ;;  %v693_v18 = vadd.f32 %v1318_v37, %v692_v15 }
  0xf3   : > { %903 = vst.msk [vmem:[%s1325_s26 + $0x130] sm:$0xff] %vm864_vm3, %v838_v11  ;;  %869 = vst.msk [vmem:[%s1325_s26 + $0x20] sm:$0xff] %vm864_vm3, %v804_v12  ;;  %v839_v19 = vmax.f32 %v701_v13, 0.0  ;;  %v805_v20 = vmax.f32 %v565_v14, 0.0 }
  0xf4   : > { %901 = vst.msk [vmem:[%s1325_s26 + $0x120] sm:$0xff] %vm864_vm3, %v836_v16  ;;  %872 = vst.msk [vmem:[%s1325_s26 + $0x38] sm:$0xff] %vm864_vm3, %v807_v17  ;;  %v837_v21 = vmax.f32 %v693_v18, 0.0 }
  0xf5   : > { %904 = vst.msk [vmem:[%s1325_s26 + $0x138] sm:$0xff] %vm864_vm3, %v839_v19  ;;  %870 = vst.msk [vmem:[%s1325_s26 + $0x28] sm:$0xff] %vm864_vm3, %v805_v20  ;;  %v1106_v22 = vpop.f32.mrb[8].mxu0 }
  0xf6   : > { %902 = vst.msk [vmem:[%s1325_s26 + $0x128] sm:$0xff] %vm864_vm3, %v837_v21  ;;  %v586_v23 = vadd.f32 %v1106_v22, %v1318_v37  ;;  %v1138_v24 = vpop.f32.mrb[8].mxu1  ;;  %v577_v25 = vpop.f32.mrb[9].mxu0 }
  0xf7   : > { %v714_v26 = vadd.f32 %v1138_v24, %v1318_v37  ;;  %v578_v27 = vadd.f32 %v1318_v37, %v577_v25  ;;  %v705_v28 = vpop.f32.mrb[9].mxu1  ;;  %v1107_v29 = vpop.f32.mrb[10].mxu0 }
  0xf8   : > { %v810_v30 = vmax.f32 %v586_v23, 0.0  ;;  %v706_v31 = vadd.f32 %v1318_v37, %v705_v28  ;;  %v589_v32 = vadd.f32 %v1107_v29, %v1318_v37  ;;  %v1139_v33 = vpop.f32.mrb[10].mxu1  ;;  %v580_v34 = vpop.f32.mrb[11].mxu0 }
  0xf9   : > { %v842_v35 = vmax.f32 %v714_v26, 0.0  ;;  %v808_v36 = vmax.f32 %v578_v27, 0.0  ;;  %v717_v38 = vadd.f32 %v1139_v33, %v1318_v37  ;;  %v581_v39 = vadd.f32 %v1318_v37, %v580_v34  ;;  %v708_v40 = vpop.f32.mrb[11].mxu1 }
  0xfa   : > { %875 = vst.msk [vmem:[%s1325_s26 + $0x50] sm:$0xff] %vm864_vm3, %v810_v30  ;;  %v840_v41 = vmax.f32 %v706_v31, 0.0  ;;  %v811_v42 = vmax.f32 %v589_v32, 0.0  ;;  %v709_v43 = vadd.f32 %v1318_v37, %v708_v40 }
  0xfb   : > { %907 = vst.msk [vmem:[%s1325_s26 + $0x150] sm:$0xff] %vm864_vm3, %v842_v35  ;;  %873 = vst.msk [vmem:[%s1325_s26 + $0x40] sm:$0xff] %vm864_vm3, %v808_v36  ;;  %v843_v44 = vmax.f32 %v717_v38, 0.0  ;;  %v809_v45 = vmax.f32 %v581_v39, 0.0 }
  0xfc   : > { %905 = vst.msk [vmem:[%s1325_s26 + $0x140] sm:$0xff] %vm864_vm3, %v840_v41  ;;  %876 = vst.msk [vmem:[%s1325_s26 + $0x58] sm:$0xff] %vm864_vm3, %v811_v42  ;;  %v841_v46 = vmax.f32 %v709_v43, 0.0 }
  0xfd   : > { %908 = vst.msk [vmem:[%s1325_s26 + $0x158] sm:$0xff] %vm864_vm3, %v843_v44  ;;  %874 = vst.msk [vmem:[%s1325_s26 + $0x48] sm:$0xff] %vm864_vm3, %v809_v45  ;;  %v1110_v47 = vpop.f32.mrb[12].mxu0 }
  0xfe   : > { %906 = vst.msk [vmem:[%s1325_s26 + $0x148] sm:$0xff] %vm864_vm3, %v841_v46  ;;  %v602_v48 = vadd.f32 %v1110_v47, %v1318_v37  ;;  %v1142_v49 = vpop.f32.mrb[12].mxu1  ;;  %v593_v50 = vpop.f32.mrb[13].mxu0 }
  0xff   : > { %v730_v51 = vadd.f32 %v1142_v49, %v1318_v37  ;;  %v594_v52 = vadd.f32 %v1318_v37, %v593_v50  ;;  %v721_v53 = vpop.f32.mrb[13].mxu1  ;;  %v1111_v54 = vpop.f32.mrb[14].mxu0 }
 0x100   : > { %v814_v55 = vmax.f32 %v602_v48, 0.0  ;;  %v722_v56 = vadd.f32 %v1318_v37, %v721_v53  ;;  %v605_v57 = vadd.f32 %v1111_v54, %v1318_v37  ;;  %v1143_v58 = vpop.f32.mrb[14].mxu1  ;;  %v596_v59 = vpop.f32.mrb[15].mxu0 }
 0x101   : > { %v846_v60 = vmax.f32 %v730_v51, 0.0  ;;  %v812_v61 = vmax.f32 %v594_v52, 0.0  ;;  %v733_v62 = vadd.f32 %v1143_v58, %v1318_v37  ;;  %v597_v63 = vadd.f32 %v1318_v37, %v596_v59  ;;  %v724_v0 = vpop.f32.mrb[15].mxu1 }
 0x102   : > { %879 = vst.msk [vmem:[%s1325_s26 + $0x70] sm:$0xff] %vm864_vm3, %v814_v55  ;;  %v844_v1 = vmax.f32 %v722_v56, 0.0  ;;  %v815_v2 = vmax.f32 %v605_v57, 0.0  ;;  %v725_v3 = vadd.f32 %v1318_v37, %v724_v0 }
 0x103   : > { %911 = vst.msk [vmem:[%s1325_s26 + $0x170] sm:$0xff] %vm864_vm3, %v846_v60  ;;  %877 = vst.msk [vmem:[%s1325_s26 + $0x60] sm:$0xff] %vm864_vm3, %v812_v61  ;;  %v847_v4 = vmax.f32 %v733_v62, 0.0  ;;  %v813_v5 = vmax.f32 %v597_v63, 0.0 }
 0x104   : > { %909 = vst.msk [vmem:[%s1325_s26 + $0x160] sm:$0xff] %vm864_vm3, %v844_v1  ;;  %880 = vst.msk [vmem:[%s1325_s26 + $0x78] sm:$0xff] %vm864_vm3, %v815_v2  ;;  %v845_v6 = vmax.f32 %v725_v3, 0.0 }
 0x105   : > { %912 = vst.msk [vmem:[%s1325_s26 + $0x178] sm:$0xff] %vm864_vm3, %v847_v4  ;;  %878 = vst.msk [vmem:[%s1325_s26 + $0x68] sm:$0xff] %vm864_vm3, %v813_v5  ;;  %v1114_v7 = vpop.f32.mrb[16].mxu0 }
 0x106   : > { %910 = vst.msk [vmem:[%s1325_s26 + $0x168] sm:$0xff] %vm864_vm3, %v845_v6  ;;  %v618_v8 = vadd.f32 %v1114_v7, %v1318_v37  ;;  %v1146_v9 = vpop.f32.mrb[16].mxu1  ;;  %v609_v10 = vpop.f32.mrb[17].mxu0 }
 0x107   : > { %v746_v11 = vadd.f32 %v1146_v9, %v1318_v37  ;;  %v610_v12 = vadd.f32 %v1318_v37, %v609_v10  ;;  %v737_v13 = vpop.f32.mrb[17].mxu1  ;;  %v1115_v14 = vpop.f32.mrb[18].mxu0 }
 0x108   : > { %v818_v15 = vmax.f32 %v618_v8, 0.0  ;;  %v738_v16 = vadd.f32 %v1318_v37, %v737_v13  ;;  %v621_v17 = vadd.f32 %v1115_v14, %v1318_v37  ;;  %v1147_v18 = vpop.f32.mrb[18].mxu1  ;;  %v612_v19 = vpop.f32.mrb[19].mxu0 }
 0x109   : > { %v850_v20 = vmax.f32 %v746_v11, 0.0  ;;  %v816_v21 = vmax.f32 %v610_v12, 0.0  ;;  %v749_v22 = vadd.f32 %v1147_v18, %v1318_v37  ;;  %v613_v23 = vadd.f32 %v1318_v37, %v612_v19  ;;  %v740_v24 = vpop.f32.mrb[19].mxu1 }
 0x10a   : > { %883 = vst.msk [vmem:[%s1325_s26 + $0x90] sm:$0xff] %vm864_vm3, %v818_v15  ;;  %v848_v25 = vmax.f32 %v738_v16, 0.0  ;;  %v819_v26 = vmax.f32 %v621_v17, 0.0  ;;  %v741_v27 = vadd.f32 %v1318_v37, %v740_v24 }
 0x10b   : > { %915 = vst.msk [vmem:[%s1325_s26 + $0x190] sm:$0xff] %vm864_vm3, %v850_v20  ;;  %881 = vst.msk [vmem:[%s1325_s26 + $0x80] sm:$0xff] %vm864_vm3, %v816_v21  ;;  %v851_v28 = vmax.f32 %v749_v22, 0.0  ;;  %v817_v29 = vmax.f32 %v613_v23, 0.0 }
 0x10c   : > { %913 = vst.msk [vmem:[%s1325_s26 + $0x180] sm:$0xff] %vm864_vm3, %v848_v25  ;;  %884 = vst.msk [vmem:[%s1325_s26 + $0x98] sm:$0xff] %vm864_vm3, %v819_v26  ;;  %v849_v30 = vmax.f32 %v741_v27, 0.0 }
 0x10d   : > { %916 = vst.msk [vmem:[%s1325_s26 + $0x198] sm:$0xff] %vm864_vm3, %v851_v28  ;;  %882 = vst.msk [vmem:[%s1325_s26 + $0x88] sm:$0xff] %vm864_vm3, %v817_v29  ;;  %v1118_v31 = vpop.f32.mrb[20].mxu0 }
 0x10e   : > { %914 = vst.msk [vmem:[%s1325_s26 + $0x188] sm:$0xff] %vm864_vm3, %v849_v30  ;;  %v634_v32 = vadd.f32 %v1118_v31, %v1318_v37  ;;  %v1150_v33 = vpop.f32.mrb[20].mxu1  ;;  %v625_v34 = vpop.f32.mrb[21].mxu0 }
 0x10f   : > { %v762_v35 = vadd.f32 %v1150_v33, %v1318_v37  ;;  %v626_v36 = vadd.f32 %v1318_v37, %v625_v34  ;;  %v753_v38 = vpop.f32.mrb[21].mxu1  ;;  %v1119_v39 = vpop.f32.mrb[22].mxu0 }
 0x110   : > { %v822_v40 = vmax.f32 %v634_v32, 0.0  ;;  %v754_v41 = vadd.f32 %v1318_v37, %v753_v38  ;;  %v637_v42 = vadd.f32 %v1119_v39, %v1318_v37  ;;  %v1151_v43 = vpop.f32.mrb[22].mxu1  ;;  %v628_v44 = vpop.f32.mrb[23].mxu0 }
 0x111   : > { %v854_v45 = vmax.f32 %v762_v35, 0.0  ;;  %v820_v46 = vmax.f32 %v626_v36, 0.0  ;;  %v765_v47 = vadd.f32 %v1151_v43, %v1318_v37  ;;  %v629_v48 = vadd.f32 %v1318_v37, %v628_v44  ;;  %v756_v49 = vpop.f32.mrb[23].mxu1 }
 0x112   : > { %887 = vst.msk [vmem:[%s1325_s26 + $0xb0] sm:$0xff] %vm864_vm3, %v822_v40  ;;  %v852_v50 = vmax.f32 %v754_v41, 0.0  ;;  %v823_v51 = vmax.f32 %v637_v42, 0.0  ;;  %v757_v52 = vadd.f32 %v1318_v37, %v756_v49 }
 0x113   : > { %919 = vst.msk [vmem:[%s1325_s26 + $0x1b0] sm:$0xff] %vm864_vm3, %v854_v45  ;;  %885 = vst.msk [vmem:[%s1325_s26 + $0xa0] sm:$0xff] %vm864_vm3, %v820_v46  ;;  %v855_v53 = vmax.f32 %v765_v47, 0.0  ;;  %v821_v54 = vmax.f32 %v629_v48, 0.0 }
 0x114   : > { %917 = vst.msk [vmem:[%s1325_s26 + $0x1a0] sm:$0xff] %vm864_vm3, %v852_v50  ;;  %888 = vst.msk [vmem:[%s1325_s26 + $0xb8] sm:$0xff] %vm864_vm3, %v823_v51  ;;  %v853_v55 = vmax.f32 %v757_v52, 0.0 }
 0x115   : > { %920 = vst.msk [vmem:[%s1325_s26 + $0x1b8] sm:$0xff] %vm864_vm3, %v855_v53  ;;  %886 = vst.msk [vmem:[%s1325_s26 + $0xa8] sm:$0xff] %vm864_vm3, %v821_v54  ;;  %v1122_v56 = vpop.f32.mrb[24].mxu0 }
 0x116   : > { %918 = vst.msk [vmem:[%s1325_s26 + $0x1a8] sm:$0xff] %vm864_vm3, %v853_v55  ;;  %v650_v57 = vadd.f32 %v1122_v56, %v1318_v37  ;;  %v1154_v58 = vpop.f32.mrb[24].mxu1  ;;  %v641_v59 = vpop.f32.mrb[25].mxu0 }
 0x117   : > { %v778_v60 = vadd.f32 %v1154_v58, %v1318_v37  ;;  %v642_v61 = vadd.f32 %v1318_v37, %v641_v59  ;;  %v769_v62 = vpop.f32.mrb[25].mxu1  ;;  %v1123_v63 = vpop.f32.mrb[26].mxu0 }
 0x118   : > { %v826_v0 = vmax.f32 %v650_v57, 0.0  ;;  %v770_v1 = vadd.f32 %v1318_v37, %v769_v62  ;;  %v653_v2 = vadd.f32 %v1123_v63, %v1318_v37  ;;  %v1155_v3 = vpop.f32.mrb[26].mxu1  ;;  %v644_v4 = vpop.f32.mrb[27].mxu0 }
 0x119   : > { %v858_v5 = vmax.f32 %v778_v60, 0.0  ;;  %v824_v6 = vmax.f32 %v642_v61, 0.0  ;;  %v781_v7 = vadd.f32 %v1155_v3, %v1318_v37  ;;  %v645_v8 = vadd.f32 %v1318_v37, %v644_v4  ;;  %v772_v9 = vpop.f32.mrb[27].mxu1 }
 0x11a   : > { %891 = vst.msk [vmem:[%s1325_s26 + $0xd0] sm:$0xff] %vm864_vm3, %v826_v0  ;;  %v856_v10 = vmax.f32 %v770_v1, 0.0  ;;  %v827_v11 = vmax.f32 %v653_v2, 0.0  ;;  %v773_v12 = vadd.f32 %v1318_v37, %v772_v9 }
 0x11b   : > { %923 = vst.msk [vmem:[%s1325_s26 + $0x1d0] sm:$0xff] %vm864_vm3, %v858_v5  ;;  %889 = vst.msk [vmem:[%s1325_s26 + $0xc0] sm:$0xff] %vm864_vm3, %v824_v6  ;;  %v859_v13 = vmax.f32 %v781_v7, 0.0  ;;  %v825_v14 = vmax.f32 %v645_v8, 0.0 }
 0x11c   : > { %921 = vst.msk [vmem:[%s1325_s26 + $0x1c0] sm:$0xff] %vm864_vm3, %v856_v10  ;;  %892 = vst.msk [vmem:[%s1325_s26 + $0xd8] sm:$0xff] %vm864_vm3, %v827_v11  ;;  %v857_v15 = vmax.f32 %v773_v12, 0.0 }
 0x11d   : > { %924 = vst.msk [vmem:[%s1325_s26 + $0x1d8] sm:$0xff] %vm864_vm3, %v859_v13  ;;  %890 = vst.msk [vmem:[%s1325_s26 + $0xc8] sm:$0xff] %vm864_vm3, %v825_v14  ;;  %v1126_v16 = vpop.f32.mrb[28].mxu0 }
 0x11e   : > { %922 = vst.msk [vmem:[%s1325_s26 + $0x1c8] sm:$0xff] %vm864_vm3, %v857_v15  ;;  %v666_v17 = vadd.f32 %v1126_v16, %v1318_v37  ;;  %v1158_v18 = vpop.f32.mrb[28].mxu1  ;;  %v657_v19 = vpop.f32.mrb[29].mxu0 }
 0x11f   : > { %v794_v20 = vadd.f32 %v1158_v18, %v1318_v37  ;;  %v658_v21 = vadd.f32 %v1318_v37, %v657_v19  ;;  %v785_v22 = vpop.f32.mrb[29].mxu1  ;;  %v1127_v23 = vpop.f32.mrb[30].mxu0 }
 0x120   : > { %v830_v24 = vmax.f32 %v666_v17, 0.0  ;;  %v786_v25 = vadd.f32 %v1318_v37, %v785_v22  ;;  %v669_v26 = vadd.f32 %v1127_v23, %v1318_v37  ;;  %v1159_v27 = vpop.f32.mrb[30].mxu1  ;;  %v660_v28 = vpop.f32.mrb[31].mxu0 }
 0x121   : > { %v862_v29 = vmax.f32 %v794_v20, 0.0  ;;  %v828_v30 = vmax.f32 %v658_v21, 0.0  ;;  %v797_v31 = vadd.f32 %v1159_v27, %v1318_v37  ;;  %v661_v32 = vadd.f32 %v1318_v37, %v660_v28  ;;  %v788_v33 = vpop.f32.mrb[31].mxu1 }
 0x122   : > { %895 = vst.msk [vmem:[%s1325_s26 + $0xf0] sm:$0xff] %vm864_vm3, %v830_v24  ;;  %v860_v34 = vmax.f32 %v786_v25, 0.0  ;;  %v831_v35 = vmax.f32 %v669_v26, 0.0  ;;  %v789_v36 = vadd.f32 %v1318_v37, %v788_v33 }
 0x123   : > { %927 = vst.msk [vmem:[%s1325_s26 + $0x1f0] sm:$0xff] %vm864_vm3, %v862_v29  ;;  %893 = vst.msk [vmem:[%s1325_s26 + $0xe0] sm:$0xff] %vm864_vm3, %v828_v30  ;;  %v863_v38 = vmax.f32 %v797_v31, 0.0  ;;  %v829_v39 = vmax.f32 %v661_v32, 0.0 }
 0x124   : > { %925 = vst.msk [vmem:[%s1325_s26 + $0x1e0] sm:$0xff] %vm864_vm3, %v860_v34  ;;  %896 = vst.msk [vmem:[%s1325_s26 + $0xf8] sm:$0xff] %vm864_vm3, %v831_v35  ;;  %v861_v40 = vmax.f32 %v789_v36, 0.0 }
 0x125   : > { %928 = vst.msk [vmem:[%s1325_s26 + $0x1f8] sm:$0xff] %vm864_vm3, %v863_v38  ;;  %894 = vst.msk [vmem:[%s1325_s26 + $0xe8] sm:$0xff] %vm864_vm3, %v829_v39 }
 0x126   : > { %926 = vst.msk [vmem:[%s1325_s26 + $0x1e8] sm:$0xff] %vm864_vm3, %v861_v40 }
 0x127 PF: > { %s13_s12 = sadd.s32 1, %s1209_s12  }
 0x128   : > { %p10_p4 = scmp.ge.s32.totalorder %s13_s12, 4  }
 0x12a   :  { %12 = sbr.rel (!%p10_p4) target bundleno = 1 (0x1), region = 62 }

</bundles_post_ra>
